<compile_context>
chip_gen: v7x
topology: tpu7x:2x2x1
jax: 0.10.0
libtpu: 0.0.40
codegen_flags: <defaults>
</compile_context>

<pallas_src>
import functools
import math

import jax
import jax.numpy as jnp
from jax import lax
from jax.experimental import pallas as pl
from jax.experimental.pallas import tpu as pltpu


def _lora_delta_kernel(bt_ref, a_ref, o_ref, *, scaling: float):
    # bt_ref: (1, rank, TM)   -- lora_B pre-transposed, rank on sublanes
    # a_ref:  (1, rank, TN)   -- lora_A, rank on sublanes
    # o_ref:  (1, TM, TN)
    bt = bt_ref[0] * scaling            # scale the SMALL (rank x TM) operand
    a = a_ref[0]                        # (rank, TN)
    acc = lax.dot_general(              # contract rank (sublane axis for both)
        bt, a,
        dimension_numbers=(((0,), (0,)), ((), ())),
        preferred_element_type=jnp.float32,
    )                                   # (TM, TN) f32 accumulation on the MXU
    o_ref[0] = acc.astype(o_ref.dtype)


def _pick_tile(dim: int, target: int, base: int = 128) -> int:
    """Largest multiple of `base` that divides `dim` and is <= target.

    Falls back to the full dim (always a legal block size) if `dim` is not a
    multiple of `base` or no such divisor exists.
    """
    if dim <= target or dim % base != 0:
        return dim
    t = (target // base) * base
    while t >= base:
        if dim % t == 0:
            return t
        t -= base
    return dim


def lora_forward(
    lora_B: jax.Array,
    lora_A: jax.Array,
    scaling: float,
    *,
    tm_target: int = 256,    # sublane tile of out_dim (multiple of 128)
    tn_target: int = 4096,   # lane tile of in_dim (large multiple of 128 -> unmasked vst)
) -> jax.Array:
    """Batched per-layer (B @ A) * scaling, tiled over the output."""
    n_layers, out_dim, rank = lora_B.shape
    n_layers_a, rank_a, in_dim = lora_A.shape
    assert n_layers == n_layers_a and rank == rank_a

    # One tiny transpose outside the kernel: (n_layers, out_dim, rank) ->
    # (n_layers, rank, out_dim). rank lands on the sublane axis in VMEM,
    # shrinking the B tile ~TM/rank-fold vs. rank-on-lanes padding.
    lora_Bt = jnp.swapaxes(lora_B, 1, 2)

    tm = _pick_tile(out_dim, tm_target, 128)
    tn = _pick_tile(in_dim, tn_target, 128)
    # in_dim tiles innermost: the B^T tile is re-used across the whole row.
    grid = (n_layers, out_dim // tm, in_dim // tn)

    kernel = functools.partial(_lora_delta_kernel, scaling=float(scaling))

    out_dtype = lora_A.dtype
    out_bytes = n_layers * out_dim * in_dim * jnp.dtype(out_dtype).itemsize
    in_bytes = (lora_A.size * lora_A.dtype.itemsize
                + lora_Bt.size * lora_Bt.dtype.itemsize)
    cost = pl.CostEstimate(
        flops=2 * n_layers * out_dim * in_dim * rank,
        transcendentals=0,
        bytes_accessed=out_bytes + in_bytes,   # dominated by the writeback
    )

    return pl.pallas_call(
        kernel,
        out_shape=jax.ShapeDtypeStruct((n_layers, out_dim, in_dim), out_dtype),
        grid_spec=pltpu.PrefetchScalarGridSpec(
            num_scalar_prefetch=0,
            grid=grid,
            in_specs=[
                # B^T tile: (rank, TM) — rank on sublanes, TM on lanes;
                # constant in j, so it stays resident across the inner axis.
                pl.BlockSpec((1, rank, tm), lambda l, i, j: (l, 0, i)),
                # A tile:   (rank, TN) — rank on sublanes, TN on lanes.
                pl.BlockSpec((1, rank, tn), lambda l, i, j: (l, 0, j)),
            ],
            out_specs=pl.BlockSpec((1, tm, tn), lambda l, i, j: (l, i, j)),
        ),
        compiler_params=pltpu.CompilerParams(
            # Every tile is independent -> let megacore (v7x) shard all axes.
            dimension_semantics=("parallel", "parallel", "parallel"),
        ),
        cost_estimate=cost,
    )(lora_Bt, lora_A)


if __name__ == "__main__":
    # Small shapes consistent with the module's __init__ (mode='default').
    in_dim, out_dim, n_layers, lora_rank, scaling = 32, 32, 4, 4, 2

    key = jax.random.PRNGKey(0)
    k_a, k_b = jax.random.split(key)

    # lora_A: kaiming_uniform_(a=sqrt(5)) on a (rank, in_dim) matrix
    #   -> Uniform(-1/sqrt(fan_in), 1/sqrt(fan_in)), fan_in = in_dim.
    bound = 1.0 / math.sqrt(in_dim)
    lora_A = jax.random.uniform(
        k_a, (n_layers, lora_rank, in_dim), jnp.float32, minval=-bound, maxval=bound
    )
    # NOTE: __init__ zero-inits lora_B (output would be trivially zero); use a
    # deterministic random init here so the kernel path is actually exercised.
    lora_B = 0.1 * jax.random.normal(k_b, (n_layers, out_dim, lora_rank), jnp.float32)

    delta = lora_forward(lora_B, lora_A, scaling)
    delta = jax.block_until_ready(delta)

    # Reference (plain JAX) check of the forward semantics.
    ref = jnp.einsum("lor,lri->loi", lora_B, lora_A) * scaling
    assert delta.shape == (n_layers, out_dim, in_dim)
    assert jnp.allclose(delta, ref, atol=1e-5, rtol=1e-5)

    print("KERNEL_OK")
</pallas_src>

<mosaic_0001>
module attributes {stable_mosaic.version = 11 : i64} {
  func.func @_lora_delta_kernel(%arg0: i32, %arg1: i32, %arg2: i32, %arg3: memref<1x4x32xf32, #tpu.memory_space<vmem>>, %arg4: memref<1x4x32xf32, #tpu.memory_space<vmem>>, %arg5: memref<1x32x32xf32, #tpu.memory_space<vmem>>) attributes {dimension_semantics = [#tpu.dimension_semantics<parallel>, #tpu.dimension_semantics<parallel>, #tpu.dimension_semantics<parallel>], iteration_bounds = array<i64: 4, 1, 1>, scalar_prefetch = 0 : i64, scratch_operands = 0 : i64, tpu.core_type = #tpu.core_type<tc>, window_params = [{transform_indices = @transform_0, window_bounds = array<i64: 1, 4, 32>}, {transform_indices = @transform_1, window_bounds = array<i64: 1, 4, 32>}, {transform_indices = @transform_2, window_bounds = array<i64: 1, 32, 32>}]} {
    %c0 = arith.constant 0 : index
    %c0_0 = arith.constant 0 : index
    %c0_1 = arith.constant 0 : index
    %0 = vector.load %arg3[%c0, %c0_0, %c0_1] : memref<1x4x32xf32, #tpu.memory_space<vmem>>, vector<1x4x32xf32>
    %1 = vector.shape_cast %0 : vector<1x4x32xf32> to vector<4x32xf32>
    %cst = arith.constant 2.000000e+00 : f32
    %2 = vector.broadcast %cst : f32 to vector<4x32xf32>
    %3 = arith.mulf %1, %2 : vector<4x32xf32>
    %c0_2 = arith.constant 0 : index
    %c0_3 = arith.constant 0 : index
    %c0_4 = arith.constant 0 : index
    %4 = vector.load %arg4[%c0_2, %c0_3, %c0_4] : memref<1x4x32xf32, #tpu.memory_space<vmem>>, vector<1x4x32xf32>
    %5 = vector.shape_cast %4 : vector<1x4x32xf32> to vector<4x32xf32>
    %cst_5 = arith.constant dense<0.000000e+00> : vector<32x32xf32>
    %6 = tpu.matmul %3, %5, %cst_5 {dimension_numbers = #tpu.dot_dimension_numbers<[0], [0], [1], [1], [0, 1, 1, 1], [], []>} : vector<4x32xf32>, vector<4x32xf32>, vector<32x32xf32> -> vector<32x32xf32>
    %c0_6 = arith.constant 0 : index
    %c0_7 = arith.constant 0 : index
    %c0_8 = arith.constant 0 : index
    %7 = vector.load %arg5[%c0_6, %c0_7, %c0_8] : memref<1x32x32xf32, #tpu.memory_space<vmem>>, vector<1x32x32xf32>
    %8 = vector.shape_cast %7 : vector<1x32x32xf32> to vector<32x32xf32>
    %9 = vector.shape_cast %6 : vector<32x32xf32> to vector<1x32x32xf32>
    tpu.vector_store %arg5[%c0_6, %c0_7, %c0_8], %9 {strides = array<i32>} : memref<1x32x32xf32, #tpu.memory_space<vmem>>, vector<1x32x32xf32>,
    return
  }
  func.func @transform_0(%arg0: i32, %arg1: i32, %arg2: i32) -> (i32, i32, i32) {
    %c0_i32 = arith.constant 0 : i32
    %c0_i32_0 = arith.constant 0 : i32
    return %arg0, %c0_i32, %arg1 : i32, i32, i32
  }
  func.func @transform_1(%arg0: i32, %arg1: i32, %arg2: i32) -> (i32, i32, i32) {
    %c0_i32 = arith.constant 0 : i32
    %c0_i32_0 = arith.constant 0 : i32
    return %arg0, %c0_i32, %arg2 : i32, i32, i32
  }
  func.func @transform_2(%arg0: i32, %arg1: i32, %arg2: i32) -> (i32, i32, i32) {
    %c0_i32 = arith.constant 0 : i32
    return %arg0, %arg1, %arg2 : i32, i32, i32
  }
}

</mosaic_0001>

<bundles_post_ra>
// kernel: tpu_custom_call.1
= control target key start
LH: loop header
LB: loop body
LE: loop exit
PB: predicated region body
PF: predicated region fallthrough
CT: control target
= control target key end

     0   :  { %7 = vsyncpa [#allocation3], 0  ;;  %s995_s0 = inlined_call_operand.hbm [shape: f32[4,4,32], index: 0, kind: input, shape index: {}]   ;;  %s996_s1 = inlined_call_operand.hbm [shape: f32[4,4,32], index: 1, kind: input, shape index: {}]   ;;  %s997_s2 = inlined_call_operand.hbm [shape: f32[4,32,32], index: 2, kind: output, shape index: {}]  }
   0x1   :  { %9 = vsyncpa [#allocation3 + $0x1], 0 }
   0x2   :  { %10 = vsyncpa [#allocation6], 0 }
   0x3   :  { %12 = vsyncpa [#allocation6 + $0x1], 0 }
   0x4   :  { %13 = vsyncpa [#allocation4], 0 }
   0x5   :  { %15 = vsyncpa [#allocation4 + $0x1], 0  ;;  %s774_s9 = smov 0   ;;  %s776_s10 = smov 0  }
   0x6   :  { %s778_s11 = smov 0   ;;  %s780_s12 = smov 0  }
   0x7   :  { %s782_s13 = smov 0   ;;  %s784_s14 = smov 0  }
   0x8 LB: > { %s498_s15 = sadd.s32 4294967295, %s752_s14   ;;  %s499_s16 = sadd.s32 4294967294, %s752_s14   ;;  %s752_s14 = sphi %s784_s14, %s21_s14   ;;  %s748_s13 = sphi %s782_s13, %s1016_s13   ;;  %s744_s12 = sphi %s780_s12, %s1015_s12   ;;  %s740_s11 = sphi %s778_s11, %s1014_s11   ;;  %s736_s10 = sphi %s776_s10, %s1013_s10   ;;  %s732_s9 = sphi %s774_s9, %s1012_s9  }
   0x9   : > { %s40_s17 = sadd.s32 1, %s748_s13  ;;  %s49_s18 = sadd.s32 1, %s740_s11 }
   0xa   : > { %p42_p0 = scmp.ge.s32.totalorder %s40_s17, 4  ;;  %p56_p1 = scmp.ne.s32.totalorder %s740_s11, %s736_s10 }
   0xb   : > { %p57_p2 = scmp.eq.s32.totalorder %s752_s14, 0  ;;  %p62_p3 = scmp.ne.s32.totalorder %s736_s10, %s732_s9 }
   0xc   : > { %s1018_s17 = smov (%p42_p0, %s40_s17), 0  ;;  %p63_p5 = scmp.eq.s32.totalorder %s498_s15, 0 }
   0xd   : > { %p815_p4 = por %p57_p2, %p56_p1  ;;  %s44_s20 = ssub.s32 %s748_s13, %s1018_s17 }
   0xe   : > { %p118_p6 = scmp.eq.s32.totalorder %s498_s15, 3  ;;  %p47_p7 = scmp.eq.s32.totalorder %s44_s20, 0 }
   0xf   : > { %p821_p8 = por %p63_p5, %p62_p3  ;;  %p124_p10 = scmp.eq.s32.totalorder %s499_s16, 3 }
  0x10   : > { %p825_p9 = por %p118_p6, %p56_p1  ;;  %p553_p12 = scmp.lt.s32.totalorder %s752_s14, 4 }
  0x11   : > { %s1001_s21 = scalar_select %p821_p8, 1, 0 }
  0x12   : > { %s1002_s22 = scalar_select %p825_p9, 1, 0 }
  0x13   : > { %s830_s23 = scalar_select %p47_p7, %s740_s11, %s49_s18  }
  0x14   : > { %p832_p11 = por %p124_p10, %p62_p3  ;;  %s838_s25 = sand.u32 1, %s740_s11  }
  0x15   : > { %s502_s26 = sshll.u32 %s838_s25, 2  ;;  %s503_s27 = sshll.u32 %s748_s13, 6 }
  0x16   : > { %s1003_s24 = scalar_select %p832_p11, 1, 0 }
  0x17   : > { %s847_s30 = scalar_lea.hbm %s995_s0, %s503_s27  ;;  %s148_s3 = scalar_lea.vmem [#allocation2], %s502_s26 }
  0x18   : > { %s156_s4 = sshll.u32 %s148_s3, 4  ;;  %p855_p13 = pnand %p553_p12, %p815_p4  ;;  %s851_s4 = int_to_ptr.vmem [resolvable:$true] %s156_s4 }
  0x19   : > { %s145_s6 = scalar_lea.sflag [#allocation3], %s838_s25  ;;  %s606_s7 = scalar_lea.hbm %s847_s30, 64 }
  0x1a   : > { %p607_p2 = scmp.ne.s32.totalorder %s847_s30, %s606_s7  ;;  %p608_p3 = pneg %p855_p13 }
  0x1b   : > { %s611_s16 = scalar_lea.hbm %s995_s0, 256  ;;  %p612_p4 = scmp.lt.u32.totalorder %s847_s30, %s995_s0 }
  0x1c   : > { %p609_p5 = pnand %p608_p3, %p607_p2  ;;  %p613_p7 = scmp.lt.u32.totalorder %s611_s16, %s606_s7 }
  0x1d   : > { %p615_p12 = scmp.lt.u32.totalorder %s606_s7, %s847_s30 }
  0x1e   : > { %p610_p6 = pneg %p609_p5  ;;  %p614_p10 = por %p613_p7, %p612_p4 }
  0x20   : > { %p616_p0 = por %p615_p12, %p614_p10 }
  0x22   : > { %p617_p1 = pnand %p616_p0, %p610_p6 }
  0x24   : > { %620 = shalt.err (!%p617_p1)
}
  0x25   : > { %s621_s20 = scalar_lea.vmem %s851_s4, 64  ;;  %s754_s28 = smov [#allocation2]  }
  0x26   : > { %p622_p2 = scmp.ne.s32.totalorder %s851_s4, %s621_s20  ;;  %s626_s29 = sshll.u32 %s754_s28, 4  ;;  %s627_s29 = int_to_ptr.vmem [resolvable:$false] %s626_s29 }
  0x27   : > { %s628_s3 = scalar_lea.vmem %s627_s29, 128  ;;  %p629_p9 = scmp.lt.s32.totalorder %s851_s4, %s627_s29 }
  0x28   : > { %p624_p5 = pnand %p622_p2, %p608_p3  ;;  %p630_p4 = scmp.lt.s32.totalorder %s628_s3, %s621_s20 }
  0x2a   : > { %p625_p11 = pneg %p624_p5  ;;  %p631_p7 = por %p630_p4, %p629_p9 }
  0x2c   : > { %p632_p10 = pnand %p631_p7, %p625_p11 }
  0x2e   : > { %635 = shalt.err (!%p632_p10)
}
  0x2f   : > { %545 = dma.hbm_to_vmem [thread:$0]  (!%p855_p13), %s847_s30, 64, %s851_s4, %s145_s6  }
  0x30   : > { %p1005_p0 = scmp.lt.s32.totalorder %s752_s14, 5  ;;  %p1006_p1 = scmp.ge.s32.totalorder %s752_s14, 1 }
  0x31   : > { %s900_s16 = scalar_lea.hbm %s996_s1, %s503_s27  ;;  %s167_s18 = scalar_lea.vmem [#allocation5], %s502_s26 }
  0x32   : > { %p891_p6 = pnand %p1006_p1, %p1005_p0  ;;  %s175_s19 = sshll.u32 %s167_s18, 4  ;;  %s176_s19 = int_to_ptr.vmem [resolvable:$true] %s175_s19 }
  0x33   : > { %s164_s30 = scalar_lea.sflag [#allocation6], %s838_s25  ;;  %s636_s4 = scalar_lea.hbm %s900_s16, 64 }
  0x34   : > { %s1007_s7 = scalar_select %p891_p6, 1, 0 }
  0x35   : > { %p637_p9 = scmp.ne.s32.totalorder %s900_s16, %s636_s4  ;;  %s641_s27 = scalar_lea.hbm %s996_s1, 256 }
  0x36   : > { %p642_p2 = scmp.lt.u32.totalorder %s900_s16, %s996_s1  ;;  %p643_p5 = scmp.lt.u32.totalorder %s641_s27, %s636_s4 }
  0x37   : > { %p639_p11 = pnand %p637_p9, %p608_p3  ;;  %p645_p7 = scmp.lt.u32.totalorder %s636_s4, %s900_s16 }
  0x38   : > { %p644_p4 = por %p643_p5, %p642_p2 }
  0x39   : > { %p640_p12 = pneg %p639_p11 }
  0x3a   : > { %p646_p10 = por %p645_p7, %p644_p4 }
  0x3c   : > { %p647_p0 = pnand %p646_p10, %p640_p12 }
  0x3e   : > { %650 = shalt.err (!%p647_p0)
}
  0x3f   : > { %s651_s25 = scalar_lea.vmem %s176_s19, 64  ;;  %s755_s26 = smov [#allocation5]  }
  0x40   : > { %p652_p1 = scmp.ne.s32.totalorder %s176_s19, %s651_s25  ;;  %s656_s3 = sshll.u32 %s755_s26, 4  ;;  %s657_s3 = int_to_ptr.vmem [resolvable:$false] %s656_s3 }
  0x41   : > { %s658_s8 = scalar_lea.vmem %s657_s3, 128  ;;  %p659_p8 = scmp.lt.s32.totalorder %s176_s19, %s657_s3 }
  0x42   : > { %p654_p9 = pnand %p652_p1, %p608_p3  ;;  %p660_p6 = scmp.lt.s32.totalorder %s658_s8, %s651_s25 }
  0x44   : > { %p655_p11 = pneg %p654_p9  ;;  %p661_p2 = por %p660_p6, %p659_p8 }
  0x46   : > { %p662_p5 = pnand %p661_p2, %p655_p11 }
  0x48   : > { %665 = shalt.err (!%p662_p5)
}
  0x49   : > { %548 = dma.hbm_to_vmem [thread:$0]  (!%p855_p13), %s900_s16, 64, %s176_s19, %s164_s30  }
  0x4a   : > { %p1008_p12 = scmp.ne.s32.totalorder %s1007_s7, 0 }
  0x4b   : > { %s927_s15 = sand.u32 (!%p1008_p12), 1, %s736_s10   ;;  %p1009_p3 = scmp.ne.s32.totalorder (!%p1008_p12), %s1001_s21, 0 }
  0x4c   : > { %184 = sbr.rel (%p1008_p12) target bundleno = 458 (0x1ca), region = 28  ;;  %s507_s18 = sshll.u32 (!%p1008_p12), %s927_s15, 2 }
  0x4d   : > { %s187_s4 = scalar_lea.sflag (!%p1008_p12), [#allocation3], %s927_s15  ;;  %s190_s6 = scalar_lea.vmem (!%p1008_p12), [#allocation2], %s507_s18 }
  0x53   : > { %719 = dma.done.wait (%p1009_p3), %s187_s4, 64  }
  0x54   : > { %721 = vsyncadd (%p1009_p3), %s187_s4, 4294967232  ;;  %s196_s5 = scalar_lea.sflag [#allocation6], %s927_s15  ;;  %s199_s16 = scalar_lea.vmem [#allocation5], %s507_s18 }
  0x55   : > { %723 = dma.done.wait (%p1009_p3), %s196_s5, 64  }
  0x56   : > { %725 = vsyncadd (%p1009_p3), %s196_s5, 4294967232  ;;  %v226_v0 = vld [vmem:[%s190_s6] sm:$0xf]  ;;  %v228_v2 = vld [vmem:[%s199_s16] sm:$0xf]  ;;  %vm274_vm0 = vcmask 1043456  }
  0x57   : > { %v227_v1 = vmul.f32 2.0, %v226_v0  ;;  %526 = vmatprep.subr.msk.mxu0 %vm274_vm0, %v228_v2  ;;  %534 = vmatprep.subr.msk.mxu1 %vm274_vm0, %v228_v2  ;;  %vm261_vm1 = vcmask 31744   ;;  %s509_s21 = sshll.u32 %s927_s15, 5  ;;  %vm363_vm2 = vcmask 261120   ;;  %s520_s30 = sshll.u32 %s744_s12, 9 }
  0x58   : > { %527 = vmatpush3.msk.msra.mxu0 %vm274_vm0, %v228_v2  ;;  %535 = vmatpush3.msk.msra.mxu1 %vm274_vm0, %v228_v2  ;;  %s224_s7 = scalar_lea.vmem [#allocation7], %s509_s21  ;;  %s947_s28 = scalar_lea.hbm %s997_s2, %s520_s30 }
  0x59   : > { %229 = vxpose.xlu0.b32.start.end [1/1] (short) (narrow) %v227_v1, 32  ;;  %s385_s19 = sshll.u32 %s224_s7, 4  ;;  %s369_s29 = scalar_lea.sflag [#allocation4], %s927_s15  ;;  %s942_s19 = int_to_ptr.vmem [resolvable:$true] %s385_s19 }
  0x5a   : > { %s666_s25 = scalar_lea.vmem %s942_s19, 512  ;;  %p1010_p13 = scmp.ne.s32.totalorder %s1002_s22, 0 }
  0x5b   : > { %p667_p8 = scmp.ne.s32.totalorder %s942_s19, %s666_s25  ;;  %s756_s12 = smov [#allocation7]  }
  0x5c   : > { %s670_s26 = sshll.u32 %s756_s12, 4  ;;  %s671_s26 = int_to_ptr.vmem [resolvable:$false] %s670_s26 }
  0x5d   : > { %p668_p6 = pnand %p667_p8, %p1010_p13  ;;  %s672_s3 = scalar_lea.vmem %s671_s26, 1024 }
  0x5e   : > { %p673_p7 = scmp.lt.s32.totalorder %s942_s19, %s671_s26  ;;  %p674_p10 = scmp.lt.s32.totalorder %s672_s3, %s666_s25 }
  0x5f   : > { %p669_p4 = pneg %p668_p6 }
  0x60   : > { %p675_p0 = por %p674_p10, %p673_p7 }
  0x62   : > { %p676_p1 = pnand %p675_p0, %p669_p4 }
  0xd9   : > { %v245_v3 = vpop.trf.xlu0 }
  0xda   : > { %528 = vmatprep.mubr.msk.f32.mxu0 %vm261_vm1, %v245_v3 }
  0xdd   : > { %v246_v4 = vpop.trf.xlu0 }
  0xde   : > { %529 = vmatmul.mubr.msk.f32.vlgmr.msra.gmra.mrb[0].mxu0 %vm261_vm1, %v246_v4 }
  0xe1   : > { %v247_v5 = vpop.trf.xlu0 }
  0xe2   : > { %531 = vmatprep.mubr.msk.f32.mxu1 %vm261_vm1, %v247_v5 }
  0xe5   : > { %v248_v6 = vpop.trf.xlu0 }
  0xe6   : > { %532 = vmatmul.mubr.msk.f32.vlgmr.msra.gmra.mrb[0].mxu1 %vm261_vm1, %v248_v6 }
 0x1b1   : > { %v530_v7 = vpop.f32.mrb[0].mxu0 }
 0x1b2   : > { %365 = vst.msk [vmem:[%s224_s7 + $0x8] sm:$0xff] %vm363_vm2, %v530_v7  ;;  %v344_v8 = vpop.f32.mrb[1].mxu0 }
 0x1b3   : > { %364 = vst.msk [vmem:[%s224_s7] sm:$0xff] %vm363_vm2, %v344_v8 }
 0x1b9   : > { %v533_v9 = vpop.f32.mrb[0].mxu1 }
 0x1ba   : > { %367 = vst.msk [vmem:[%s224_s7 + $0x18] sm:$0xff] %vm363_vm2, %v533_v9  ;;  %v354_v10 = vpop.f32.mrb[1].mxu1 }
 0x1bb   : > { %366 = vst.msk [vmem:[%s224_s7 + $0x10] sm:$0xff] %vm363_vm2, %v354_v10 }
 0x1bc   : > { %679 = shalt.err (!%p676_p1)
}
 0x1bd   : > { %s680_s8 = scalar_lea.hbm %s947_s28, 512  ;;  %s684_s6 = scalar_lea.hbm %s997_s2, 2048 }
 0x1be   : > { %p681_p9 = scmp.ne.s32.totalorder %s947_s28, %s680_s8  ;;  %p685_p5 = scmp.lt.u32.totalorder %s947_s28, %s997_s2 }
 0x1bf   : > { %p686_p12 = scmp.lt.u32.totalorder %s684_s6, %s680_s8  ;;  %p688_p8 = scmp.lt.u32.totalorder %s680_s8, %s947_s28 }
 0x1c0   : > { %p682_p11 = pnand %p681_p9, %p1010_p13 }
 0x1c1   : > { %p687_p3 = por %p686_p12, %p685_p5 }
 0x1c2   : > { %p683_p2 = pneg %p682_p11 }
 0x1c3   : > { %p689_p6 = por %p688_p8, %p687_p3 }
 0x1c5   : > { %p690_p4 = pnand %p689_p6, %p683_p2 }
 0x1c7   : > { %693 = shalt.err (!%p690_p4)
}
 0x1c8   : > { %s757_s21 = smov 128   ;;  %s758_s7 = smov 8  }
 0x1c9   : > { %540 = dma.vmem_to_hbm [thread:$0]  (%p1010_p13), %s942_s19, 512, %s947_s28, %s369_s29, %s757_s21, %s757_s21, %s758_s7  }
 0x1ca PF: > { %p554_p7 = scmp.ge.s32.totalorder %s752_s14, 2  ;;  %s400_s30 = sand.u32 1, %s732_s9  }
 0x1cb   : > { %p1011_p10 = scmp.ne.s32.totalorder %s1003_s24, 0  ;;  %s401_s20 = scalar_lea.sflag [#allocation4], %s400_s30 }
 0x1cd   : > { %p550_p0 = pnand %p554_p7, %p1011_p10 }
 0x1cf   : > { %727 = dma.done.wait (!%p550_p0), %s401_s20, 512  }
 0x1d0   : > { %729 = vsyncadd (!%p550_p0), %s401_s20, 4294966784  ;;  %s21_s14 = sadd.s32 1, %s752_s14   ;;  %s1012_s9 = smov %s736_s10 }
 0x1d1   : > { %p18_p1 = scmp.ge.s32.totalorder %s21_s14, 6   ;;  %s1013_s10 = smov %s740_s11 }
 0x1d2   : > { %s1014_s11 = smov %s830_s23  ;;  %s1015_s12 = smov %s748_s13 }
 0x1d3   : > { %s1016_s13 = smov %s1018_s17  ;;  %20 = sbr.rel (!%p18_p1) target bundleno = 8 (0x8), region = 86 }
 0x1da   :  { %406 = vsyncpa [#allocation3], 1 }
 0x1db   :  { %408 = vsyncpa [#allocation3 + $0x1], 1 }
 0x1dc   :  { %409 = vsyncpa [#allocation6], 1 }
 0x1dd   :  { %411 = vsyncpa [#allocation6 + $0x1], 1 }
 0x1de   :  { %412 = vsyncpa [#allocation4], 1 }
 0x1df   :  { %414 = vsyncpa [#allocation4 + $0x1], 1 }

</bundles_post_ra>
